<compile_context>
chip_gen: v7x
topology: tpu7x:2x2x1
jax: 0.10.0
libtpu: 0.0.40
codegen_flags: <defaults>
</compile_context>

<pallas_src>
import jax
import jax.numpy as jnp
from jax.experimental import pallas as pl
from jax.experimental.pallas import tpu as pltpu


def _outconv_kernel(x_ref, w_ref, b_ref, o_ref):
    """o = W @ x + b for one (batch, time-tile).  Refs are 2-D (batch dim squeezed)."""
    acc = jnp.dot(w_ref[...], x_ref[...], preferred_element_type=jnp.float32)
    o_ref[...] = (acc + b_ref[...]).astype(o_ref.dtype)


def outconv_pallas(x, w, b, *, t_tile=2048):
    """1x1 Conv1d.  x: (N, Cin, T), w: (Cout, Cin, 1) [PyTorch layout], b: (Cout,).

    t_tile: time-tile width (lane axis). 512-2048 is a good baseline on v5e/v6e;
    4096-8192 amortizes per-step overhead better on v7x.  Must be a multiple of 128
    when T > t_tile (enforced below).
    """
    N, Cin, T = x.shape
    Cout = w.shape[0]

    w2 = w.reshape(Cout, Cin).astype(x.dtype)        # squeeze k=1 once at trace time
    b2 = b.reshape(Cout, 1).astype(jnp.float32)      # broadcast over time in-kernel

    # Choose the time tile: full T if it fits in one tile, otherwise a lane-aligned tile.
    if T <= t_tile:
        tT = T                                       # full-dim block: no (8,128) constraint
        T_pad = T
    else:
        tT = (t_tile // 128) * 128                   # lane-dense tile, multiple of 128
        T_pad = pl.cdiv(T, tT) * tT
        if T_pad != T:                               # pad only when actually needed
            x = jnp.pad(x, ((0, 0), (0, 0), (0, T_pad - T)))

    n_t = T_pad // tT

    out = pl.pallas_call(
        _outconv_kernel,
        out_shape=jax.ShapeDtypeStruct((N, Cout, T_pad), x.dtype),
        grid=(N, n_t),
        in_specs=[
            # activation tile: batch squeezed, Cin on sublanes, time on lanes
            pl.BlockSpec((pl.Squeezed(), Cin, tT), lambda n, t: (n, 0, t)),
            # weight / bias: constant index_map -> fetched once, kept resident
            pl.BlockSpec((Cout, Cin), lambda n, t: (0, 0)),
            pl.BlockSpec((Cout, 1), lambda n, t: (0, 0)),
        ],
        out_specs=pl.BlockSpec((pl.Squeezed(), Cout, tT), lambda n, t: (n, 0, t)),
        compiler_params=pltpu.CompilerParams(
            dimension_semantics=("parallel", "parallel"),
        ),
    )(x, w2, b2)

    if T_pad != T:
        out = out[:, :, :T]
    return out


# TODO(synk): in a full C2F_TCN port this 10-channel head should be fused as an
# epilogue matmul into the producing layer's kernel to avoid an extra HBM round-trip
# of the (Cin, T) activation; standalone it is purely DMA-bound.


if __name__ == "__main__":
    # In C2F_TCN, outconv is Conv1d(128, num_classes, kernel_size=1).
    batch, in_ch, out_ch, T = 2, 128, 10, 512

    key = jax.random.PRNGKey(0)
    kx, kw, kb = jax.random.split(key, 3)
    x = jax.random.normal(kx, (batch, in_ch, T), jnp.float32)
    w = (jax.random.normal(kw, (out_ch, in_ch, 1), jnp.float32)
         * (1.0 / jnp.sqrt(in_ch)))
    b = 0.01 * jax.random.normal(kb, (out_ch,), jnp.float32)

    # Use a small t_tile here so the demo exercises the tiled (N, T/tT) grid path.
    fn = jax.jit(lambda x, w, b: outconv_pallas(x, w, b, t_tile=256))
    out = jax.block_until_ready(fn(x, w, b))

    # plain-JAX reference for the 1x1 conv
    ref = jnp.einsum('oc,nct->not', w[:, :, 0], x) + b[None, :, None]
    assert out.shape == (batch, out_ch, T)
    assert bool(jnp.all(jnp.isfinite(out)))
    assert bool(jnp.allclose(out, ref, atol=1e-4, rtol=1e-4))
    print("KERNEL_OK")
</pallas_src>

<mosaic_0001>
module attributes {stable_mosaic.version = 11 : i64} {
  func.func @_outconv_kernel(%arg0: i32, %arg1: i32, %arg2: memref<1x128x256xf32, #tpu.memory_space<vmem>>, %arg3: memref<10x128xf32, #tpu.memory_space<vmem>>, %arg4: memref<10x1xf32, #tpu.memory_space<vmem>>, %arg5: memref<1x10x256xf32, #tpu.memory_space<vmem>>) attributes {dimension_semantics = [#tpu.dimension_semantics<parallel>, #tpu.dimension_semantics<parallel>], iteration_bounds = array<i64: 2, 2>, scalar_prefetch = 0 : i64, scratch_operands = 0 : i64, tpu.core_type = #tpu.core_type<tc>, window_params = [{transform_indices = @transform_0, window_bounds = array<i64: 1, 128, 256>}, {pipeline_mode = #tpu.pipeline_mode<synchronous>, transform_indices = @transform_1, window_bounds = array<i64: 10, 128>}, {pipeline_mode = #tpu.pipeline_mode<synchronous>, transform_indices = @transform_2, window_bounds = array<i64: 10, 1>}, {transform_indices = @transform_3, window_bounds = array<i64: 1, 10, 256>}]} {
    %c0 = arith.constant 0 : index
    %c0_0 = arith.constant 0 : index
    %0 = vector.load %arg3[%c0, %c0_0] : memref<10x128xf32, #tpu.memory_space<vmem>>, vector<10x128xf32>
    %c0_1 = arith.constant 0 : index
    %c0_2 = arith.constant 0 : index
    %c0_3 = arith.constant 0 : index
    %1 = vector.load %arg2[%c0_1, %c0_2, %c0_3] : memref<1x128x256xf32, #tpu.memory_space<vmem>>, vector<1x128x256xf32>
    %2 = vector.shape_cast %1 : vector<1x128x256xf32> to vector<128x256xf32>
    %cst = arith.constant dense<0.000000e+00> : vector<10x256xf32>
    %3 = tpu.matmul %0, %2, %cst {dimension_numbers = #tpu.dot_dimension_numbers<[1], [0], [0], [1], [0, 0, 1, 1], [], []>} : vector<10x128xf32>, vector<128x256xf32>, vector<10x256xf32> -> vector<10x256xf32>
    %c0_4 = arith.constant 0 : index
    %c0_5 = arith.constant 0 : index
    %4 = vector.load %arg4[%c0_4, %c0_5] : memref<10x1xf32, #tpu.memory_space<vmem>>, vector<10x1xf32>
    %5 = vector.broadcast %4 : vector<10x1xf32> to vector<10x256xf32>
    %6 = arith.addf %3, %5 : vector<10x256xf32>
    %c0_6 = arith.constant 0 : index
    %c0_7 = arith.constant 0 : index
    %c0_8 = arith.constant 0 : index
    %7 = vector.load %arg5[%c0_6, %c0_7, %c0_8] : memref<1x10x256xf32, #tpu.memory_space<vmem>>, vector<1x10x256xf32>
    %8 = vector.shape_cast %7 : vector<1x10x256xf32> to vector<10x256xf32>
    %9 = vector.shape_cast %6 : vector<10x256xf32> to vector<1x10x256xf32>
    tpu.vector_store %arg5[%c0_6, %c0_7, %c0_8], %9 {strides = array<i32>} : memref<1x10x256xf32, #tpu.memory_space<vmem>>, vector<1x10x256xf32>,
    return
  }
  func.func @transform_0(%arg0: i32, %arg1: i32) -> (i32, i32, i32) {
    %c0_i32 = arith.constant 0 : i32
    %c0_i32_0 = arith.constant 0 : i32
    return %arg0, %c0_i32, %arg1 : i32, i32, i32
  }
  func.func @transform_1(%arg0: i32, %arg1: i32) -> (i32, i32) {
    %c0_i32 = arith.constant 0 : i32
    %c0_i32_0 = arith.constant 0 : i32
    %c0_i32_1 = arith.constant 0 : i32
    return %c0_i32, %c0_i32_0 : i32, i32
  }
  func.func @transform_2(%arg0: i32, %arg1: i32) -> (i32, i32) {
    %c0_i32 = arith.constant 0 : i32
    %c0_i32_0 = arith.constant 0 : i32
    %c0_i32_1 = arith.constant 0 : i32
    return %c0_i32, %c0_i32_0 : i32, i32
  }
  func.func @transform_3(%arg0: i32, %arg1: i32) -> (i32, i32, i32) {
    %c0_i32 = arith.constant 0 : i32
    %c0_i32_0 = arith.constant 0 : i32
    return %arg0, %c0_i32, %arg1 : i32, i32, i32
  }
}

</mosaic_0001>

<bundles_post_ra>
// kernel: _lambda_.1
= control target key start
LH: loop header
LB: loop body
LE: loop exit
PB: predicated region body
PF: predicated region fallthrough
CT: control target
= control target key end

     0   :  { %8 = vsyncpa [#allocation3], 0  ;;  %s922_s0 = inlined_call_operand.hbm [shape: f32[2,128,512], index: 0, kind: input, shape index: {}]   ;;  %s923_s1 = inlined_call_operand.vmem [shape: f32[10,128], index: 1, kind: input, shape index: {}]   ;;  %s924_s2 = inlined_call_operand.vmem [shape: f32[10,1], index: 2, kind: input, shape index: {}]   ;;  %s925_s3 = inlined_call_operand.vmem [shape: f32[2,10,512], index: 3, kind: output, shape index: {}]  }
   0x1   :  { %10 = vsyncpa [#allocation3 + $0x1], 0  ;;  %s712_s12 = smov 0   ;;  %s714_s13 = smov 0  }
   0x2   :  { %s716_s14 = smov 0   ;;  %s718_s15 = smov 0  }
   0x3   :  { %s720_s16 = smov 0   ;;  %s722_s17 = smov 0  }
   0x4   :  { %s724_s18 = smov 0   ;;  %s726_s19 = smov 0  }
   0x5 LB: > { %s446_s20 = sadd.s32 4294967295, %s684_s19   ;;  %s25_s21 = sadd.s32 1, %s676_s17  ;;  %s684_s19 = sphi %s726_s19, %s16_s19   ;;  %s680_s18 = sphi %s724_s18, %s937_s18   ;;  %s676_s17 = sphi %s722_s17, %s936_s17   ;;  %s672_s16 = sphi %s720_s16, %s935_s16   ;;  %s668_s15 = sphi %s718_s15, %s934_s15   ;;  %s664_s14 = sphi %s716_s14, %s933_s14   ;;  %s660_s13 = sphi %s714_s13, %s932_s13   ;;  %s656_s12 = sphi %s712_s12, %s931_s12  }
   0x6   : > { %p26_p0 = scmp.ge.s32.totalorder %s25_s21, 2  ;;  %s28_s22 = sadd.s32 1, %s680_s18 }
   0x7   : > { %s37_s23 = sadd.s32 1, %s664_s14  ;;  %p44_p1 = scmp.ne.s32.totalorder %s664_s14, %s660_s13 }
   0x8   : > { %s939_s21 = smov (%p26_p0, %s25_s21), 0  ;;  %s941_s22 = smov (!%p26_p0, %s28_s22), %s680_s18 }
   0x9   : > { %s33_s24 = ssub.s32 %s676_s17, %s939_s21  ;;  %p45_p2 = scmp.eq.s32.totalorder %s684_s19, 0 }
   0xa   : > { %p30_p3 = scmp.ge.s32.totalorder %s941_s22, 2  ;;  %p50_p4 = scmp.ne.s32.totalorder %s660_s13, %s656_s12 }
   0xb   : > { %p766_p5 = por %p45_p2, %p44_p1  ;;  %p51_p6 = scmp.eq.s32.totalorder %s446_s20, 0 }
   0xc   : > { %s943_s22 = smov (%p30_p3, %s941_s22), 0  ;;  %p118_p8 = scmp.eq.s32.totalorder %s446_s20, 3 }
   0xd   : > { %p772_p7 = por %p51_p6, %p50_p4  ;;  %s32_s27 = ssub.s32 %s680_s18, %s943_s22 }
   0xe   : > { %s34_s28 = sor.u32 %s33_s24, %s32_s27  ;;  %p781_p9 = por %p118_p8, %p44_p1 }
   0xf   : > { %p35_p10 = scmp.eq.s32.totalorder %s34_s28, 0  ;;  %p517_p11 = scmp.lt.s32.totalorder %s684_s19, 4 }
  0x10   : > { %s928_s29 = scalar_select %p781_p9, 1, 0 }
  0x11   : > { %s150_s30 = sand.u32 1, %s664_s14   ;;  %s451_s4 = sshll.u32 %s676_s17, 1 }
  0x12   : > { %s789_s5 = scalar_select %p35_p10, %s664_s14, %s37_s23  }
  0x13   : > { %s450_s6 = sshll.u32 %s150_s30, 8  ;;  %s452_s7 = sshll.u32 %s680_s18, 6 }
  0x14   : > { %s160_s8 = sadd.s32 %s452_s7, %s451_s4  ;;  %s154_s9 = scalar_lea.vmem [#allocation2], %s450_s6 }
  0x15   : > { %s163_s10 = sshll.u32 %s154_s9, 4  ;;  %s453_s11 = sshll.u32 %s160_s8, 7  ;;  %s792_s10 = int_to_ptr.vmem [resolvable:$true] %s163_s10 }
  0x16   : > { %s797_s24 = scalar_lea.hbm %s922_s0, %s453_s11  ;;  %p801_p12 = pnand %p517_p11, %p766_p5 }
  0x17   : > { %s805_s27 = scalar_lea.sflag [#allocation3], %s150_s30  ;;  %s588_s28 = scalar_lea.hbm %s797_s24, 4096 }
  0x18   : > { %p589_p13 = scmp.ne.s32.totalorder %s797_s24, %s588_s28  ;;  %p590_p0 = pneg %p801_p12 }
  0x19   : > { %s593_s6 = scalar_lea.hbm %s922_s0, 16384  ;;  %p594_p3 = scmp.lt.u32.totalorder %s797_s24, %s922_s0 }
  0x1a   : > { %p591_p1 = pnand %p590_p0, %p589_p13  ;;  %p595_p4 = scmp.lt.u32.totalorder %s593_s6, %s588_s28 }
  0x1b   : > { %p597_p6 = scmp.lt.u32.totalorder %s588_s28, %s797_s24 }
  0x1c   : > { %p592_p2 = pneg %p591_p1  ;;  %p596_p5 = por %p595_p4, %p594_p3 }
  0x1e   : > { %p598_p8 = por %p597_p6, %p596_p5 }
  0x20   : > { %p599_p10 = pnand %p598_p8, %p592_p2 }
  0x22   : > { %602 = shalt.err (!%p599_p10)
}
  0x23   : > { %s603_s30 = scalar_lea.vmem %s792_s10, 4096  ;;  %s686_s9 = smov [#allocation2]  }
  0x24   : > { %p604_p11 = scmp.ne.s32.totalorder %s792_s10, %s603_s30  ;;  %s608_s11 = sshll.u32 %s686_s9, 4  ;;  %s609_s11 = int_to_ptr.vmem [resolvable:$false] %s608_s11 }
  0x25   : > { %s610_s12 = scalar_lea.vmem %s609_s11, 8192  ;;  %p611_p9 = scmp.lt.s32.totalorder %s792_s10, %s609_s11 }
  0x26   : > { %p606_p13 = pnand %p604_p11, %p590_p0  ;;  %p612_p3 = scmp.lt.s32.totalorder %s610_s12, %s603_s30 }
  0x28   : > { %p607_p1 = pneg %p606_p13  ;;  %p613_p4 = por %p612_p3, %p611_p9 }
  0x2a   : > { %p614_p5 = pnand %p613_p4, %p607_p1 }
  0x2c   : > { %617 = shalt.err (!%p614_p5)
}
  0x2d   : > { %s687_s20 = smov 512   ;;  %s688_s28 = smov 256  }
  0x2e   : > { %s689_s25 = smov 16   ;;  %p454_p0 = scmp.ge.s32.totalorder %s684_s19, 1 }
  0x2f   : > { %516 = dma.hbm_to_vmem [thread:$0]  (!%p801_p12), %s797_s24, 4096, %s792_s10, %s805_s27, %s687_s20, %s688_s28, %s689_s25  }
  0x30   : > { %p171_p2 = scmp.lt.s32.totalorder %s684_s19, 5 }
  0x32   : > { %p172_p6 = pnand %p454_p0, %p171_p2 }
  0x33   : > { %s836_s4 = sand.u32 (!%p172_p6), 1, %s660_s13  }
  0x34   : > { %175 = sbr.rel (%p172_p6) target bundleno = 319 (0x13f), region = 32  ;;  %s455_s6 = sshll.u32 (!%p172_p6), %s836_s4, 8 }
  0x35   : > { %s178_s7 = scalar_lea.sflag (!%p172_p6), [#allocation3], %s836_s4  ;;  %s840_s8 = scalar_lea.vmem (!%p172_p6), [#allocation2], %s455_s6 }
  0x3b   : > { %651 = dma.done.wait (%p772_p7), %s178_s7, 4096  }
  0x3c   : > { %653 = vsyncadd (%p772_p7), %s178_s7, 4294963200  ;;  %v690_v0 = vmov 0.0   ;;  %v691_v1 = vmov 0   ;;  %v208_v2 = vld [vmem:[%s840_s8 + $0x8] sm:$0xff]  ;;  %v210_v3 = vld [vmem:[%s840_s8 + $0x18] sm:$0xff]  ;;  %s456_s12 = sshll.u32 %s836_s4, 5 }
  0x3d   : > { %315 = vmatprep.mubr.f32.mxu0 %v690_v0  ;;  %321 = vmatprep.mubr.f32.mxu1 %v690_v0  ;;  %v207_v4 = vld [vmem:[%s840_s8] sm:$0xff]  ;;  %v463_v5 = vpack.c.bf16 %v210_v3, %v208_v2  ;;  %v209_v6 = vld [vmem:[%s840_s8 + $0x10] sm:$0xff]  ;;  %v212_v7 = vld [vmem:[%s840_s8 + $0x28] sm:$0xff]  ;;  %s202_s20 = scalar_lea.vmem [#allocation4], %s456_s12  ;;  %p930_p7 = scmp.ne.s32.totalorder %s928_s29, 0 }
  0x3e   : > { %587 = vset.pattern.permute.xlu0 %v691_v1  ;;  %v214_v8 = vld [vmem:[%s840_s8 + $0x38] sm:$0xff]  ;;  %v465_v9 = vpack.c.bf16 %v209_v6, %v207_v4  ;;  %v211_v11 = vld [vmem:[%s840_s8 + $0x20] sm:$0xff]  ;;  %v213_v12 = vld [vmem:[%s840_s8 + $0x30] sm:$0xff]  ;;  %s458_s28 = sshll.u32 (%p930_p7), %s668_s15, 1  ;;  %s459_s25 = sshll.u32 (%p930_p7), %s672_s16, 3 }
  0x3f   : > { %v467_v10 = vpack.c.bf16 %v214_v8, %v212_v7  ;;  %v216_v13 = vld [vmem:[%s840_s8 + $0x48] sm:$0xff]  ;;  %464 = vmatprep.subr.bf16.mxu0 %v463_v5  ;;  %495 = vmatprep.subr.bf16.mxu1 %v463_v5  ;;  %v218_v14 = vld [vmem:[%s840_s8 + $0x58] sm:$0xff]  ;;  %v469_v15 = vpack.c.bf16 %v213_v12, %v211_v11  ;;  %v215_v17 = vld [vmem:[%s840_s8 + $0x40] sm:$0xff]  ;;  %s341_s4 = sadd.s32 (%p930_p7), %s459_s25, %s458_s28 }
  0x40   : > { %466 = vmatpush1.bf16.msra.mxu0 %v465_v9  ;;  %503 = vmatpush1.bf16.msra.mxu1 %v465_v9  ;;  %v471_v16 = vpack.c.bf16 %v218_v14, %v216_v13  ;;  %v217_v18 = vld [vmem:[%s840_s8 + $0x50] sm:$0xff]  ;;  %v220_v19 = vld [vmem:[%s840_s8 + $0x68] sm:$0xff]  ;;  %v222_v20 = vld [vmem:[%s840_s8 + $0x78] sm:$0xff]  ;;  %s460_s6 = sshll.u32 (%p930_p7), %s341_s4, 3 }
  0x41   : > { %468 = vmatprep.subr.bf16.mxu0 %v467_v10  ;;  %496 = vmatprep.subr.bf16.mxu1 %v467_v10  ;;  %v473_v21 = vpack.c.bf16 %v217_v18, %v215_v17  ;;  %v475_v22 = vpack.c.bf16 %v222_v20, %v220_v19  ;;  %v219_v23 = vld [vmem:[%s840_s8 + $0x60] sm:$0xff]  ;;  %v221_v24 = vld [vmem:[%s840_s8 + $0x70] sm:$0xff]  ;;  %v224_v25 = vld [vmem:[%s840_s8 + $0x88] sm:$0xff]  ;;  %s343_s26 = scalar_lea.vmem (%p930_p7), %s925_s3, %s460_s6 }
  0x42   : > { %v226_v26 = vld [vmem:[%s840_s8 + $0x98] sm:$0xff]  ;;  %v239_v27 = vld [vmem:[%s924_s2] sm:$0xff]  ;;  %v477_v28 = vpack.c.bf16 %v221_v24, %v219_v23  ;;  %v225_v31 = vld [vmem:[%s840_s8 + $0x90] sm:$0xff] }
  0x43   : > { %v479_v29 = vpack.c.bf16 %v226_v26, %v224_v25  ;;  %v223_v30 = vld [vmem:[%s840_s8 + $0x80] sm:$0xff]  ;;  %v228_v32 = vld [vmem:[%s840_s8 + $0xa8] sm:$0xff]  ;;  %v230_v33 = vld [vmem:[%s840_s8 + $0xb8] sm:$0xff]  ;;  %243 = vperm.xlu0 %587, %v239_v27  }
  0x44   : > { %470 = vmatpush1.bf16.msra.mxu0 %v469_v15  ;;  %504 = vmatpush1.bf16.msra.mxu1 %v469_v15  ;;  %v240_v34 = vld [vmem:[%s924_s2 + $0x8] sm:$0x3]  ;;  %v481_v35 = vpack.c.bf16 %v225_v31, %v223_v30  ;;  %v483_v36 = vpack.c.bf16 %v230_v33, %v228_v32  ;;  %v227_v37 = vld [vmem:[%s840_s8 + $0xa0] sm:$0xff]  ;;  %v229_v38 = vld [vmem:[%s840_s8 + $0xb0] sm:$0xff] }
  0x45   : > { %472 = vmatprep.subr.bf16.mxu0 %v471_v16  ;;  %497 = vmatprep.subr.bf16.mxu1 %v471_v16  ;;  %v232_v39 = vld [vmem:[%s840_s8 + $0xc8] sm:$0xff]  ;;  %v234_v40 = vld [vmem:[%s840_s8 + $0xd8] sm:$0xff]  ;;  %v485_v41 = vpack.c.bf16 %v229_v38, %v227_v37  ;;  %v231_v43 = vld [vmem:[%s840_s8 + $0xc0] sm:$0xff] }
  0x46   : > { %v487_v42 = vpack.c.bf16 %v234_v40, %v232_v39  ;;  %v233_v44 = vld [vmem:[%s840_s8 + $0xd0] sm:$0xff]  ;;  %v236_v45 = vld [vmem:[%s840_s8 + $0xe8] sm:$0xff]  ;;  %v238_v46 = vld [vmem:[%s840_s8 + $0xf8] sm:$0xff] }
  0x47   : > { %248 = vperm.xlu0 %587, %v240_v34   ;;  %v489_v47 = vpack.c.bf16 %v233_v44, %v231_v43  ;;  %v491_v48 = vpack.c.bf16 %v238_v46, %v236_v45  ;;  %v235_v49 = vld [vmem:[%s840_s8 + $0xe0] sm:$0xff]  ;;  %v237_v50 = vld [vmem:[%s840_s8 + $0xf0] sm:$0xff]  ;;  %v206_v53 = vld [vmem:[%s923_s1 + $0x8] sm:$0x3] }
  0x48   : > { %474 = vmatpush1.bf16.msra.mxu0 %v473_v21  ;;  %505 = vmatpush1.bf16.msra.mxu1 %v473_v21  ;;  %v493_v51 = vpack.c.bf16 %v237_v50, %v235_v49  ;;  %v205_v52 = vld [vmem:[%s923_s1] sm:$0xff] }
  0x49   : > { %476 = vmatprep.subr.bf16.mxu0 %v475_v22  ;;  %498 = vmatprep.subr.bf16.mxu1 %v475_v22 }
  0x4c   : > { %478 = vmatpush1.bf16.msra.mxu0 %v477_v28  ;;  %506 = vmatpush1.bf16.msra.mxu1 %v477_v28 }
  0x4d   : > { %480 = vmatprep.subr.bf16.mxu0 %v479_v29  ;;  %499 = vmatprep.subr.bf16.mxu1 %v479_v29 }
  0x50   : > { %482 = vmatpush1.bf16.msra.mxu0 %v481_v35  ;;  %507 = vmatpush1.bf16.msra.mxu1 %v481_v35 }
  0x51   : > { %484 = vmatprep.subr.bf16.mxu0 %v483_v36  ;;  %500 = vmatprep.subr.bf16.mxu1 %v483_v36 }
  0x54   : > { %486 = vmatpush1.bf16.msra.mxu0 %v485_v41  ;;  %508 = vmatpush1.bf16.msra.mxu1 %v485_v41 }
  0x55   : > { %488 = vmatprep.subr.bf16.mxu0 %v487_v42  ;;  %501 = vmatprep.subr.bf16.mxu1 %v487_v42 }
  0x58   : > { %490 = vmatpush1.bf16.msra.mxu0 %v489_v47  ;;  %509 = vmatpush1.bf16.msra.mxu1 %v489_v47 }
  0x59   : > { %492 = vmatprep.subr.bf16.mxu0 %v491_v48  ;;  %502 = vmatprep.subr.bf16.mxu1 %v491_v48 }
  0x5c   : > { %494 = vmatpush1.bf16.msra.mxu0 %v493_v51  ;;  %510 = vmatpush1.bf16.msra.mxu1 %v493_v51 }
  0x5f   : > { %316 = vmatmul.mubr.f32.vlgmr.msra.gmra.mrb[0].mxu0 %v205_v52  ;;  %322 = vmatmul.mubr.f32.vlgmr.msra.gmra.mrb[0].mxu1 %v206_v53 }
  0xc2   : > { %v244_v54 = vpop.permute.xlu0 %243 }
  0xc6   : > { %v249_v55 = vpop.permute.xlu0 %248 }
 0x130   : > { %338 = sbr.rel (!%p930_p7) target bundleno = 319 (0x13f), region = 40 }
 0x132   : > { %v317_v56 = vpop.f32.mrb[0].mxu0  ;;  %v323_v57 = vpop.f32.mrb[0].mxu1 }
 0x133   : > { %v318_v58 = vadd.f32 %v317_v56, %v244_v54  ;;  %v324_v59 = vadd.f32 %v323_v57, %v249_v55  ;;  %v319_v60 = vpop.f32.mrb[1].mxu0  ;;  %v325_v61 = vpop.f32.mrb[1].mxu1 }
 0x134   : > { %v320_v62 = vadd.f32 %v319_v60, %v244_v54  ;;  %v326_v63 = vadd.f32 %v325_v61, %v249_v55 }
 0x135   : > { %328 = vst [vmem:[%s202_s20] sm:$0xff] %v318_v58  ;;  %330 = vst [vmem:[%s202_s20 + $0x10] sm:$0x3] %v324_v59 }
 0x136   : > { %329 = vst [vmem:[%s202_s20 + $0x8] sm:$0xff] %v320_v62  ;;  %331 = vst [vmem:[%s202_s20 + $0x18] sm:$0x3] %v326_v63 }
 0x13c   : > { %v356_v0 = vld [vmem:[%s202_s20] sm:$0xff]  ;;  %v360_v2 = vld [vmem:[%s202_s20 + $0x10] sm:$0xff] }
 0x13d   : > { %v358_v1 = vld [vmem:[%s202_s20 + $0x8] sm:$0xff]  ;;  %v362_v3 = vld [vmem:[%s202_s20 + $0x18] sm:$0xff]  ;;  %357 = vst [vmem:[%s343_s26] sm:$0xff] %v356_v0  ;;  %361 = vst [vmem:[%s343_s26 + $0x20] sm:$0xff] %v360_v2 }
 0x13e   : > { %359 = vst [vmem:[%s343_s26 + $0x8] sm:$0xff] %v358_v1  ;;  %363 = vst [vmem:[%s343_s26 + $0x28] sm:$0xff] %v362_v3 }
 0x13f PF: > { %s16_s19 = sadd.s32 1, %s684_s19   ;;  %s931_s12 = smov %s660_s13 }
 0x140   : > { %p13_p9 = scmp.ge.s32.totalorder %s16_s19, 6   ;;  %s932_s13 = smov %s664_s14 }
 0x141   : > { %s933_s14 = smov %s789_s5  ;;  %s934_s15 = smov %s676_s17 }
 0x142   : > { %s935_s16 = smov %s680_s18  ;;  %s936_s17 = smov %s939_s21 }
 0x143   : > { %s937_s18 = smov %s943_s22  ;;  %15 = sbr.rel (!%p13_p9) target bundleno = 5 (0x5), region = 95 }
 0x14a   :  { %379 = vsyncpa [#allocation3], 1 }
 0x14b   :  { %381 = vsyncpa [#allocation3 + $0x1], 1 }

</bundles_post_ra>
